<compile_context>
chip_gen: v5e
topology: v5e:2x2
jax: 0.10.0
libtpu: 0.0.40
codegen_flags: <defaults>
</compile_context>

<pallas_src>
import numpy as np
import jax
import jax.numpy as jnp
from jax.experimental import pallas as pl
from jax.experimental.pallas import tpu as pltpu


def _bilinear_matrix(in_size: int, out_size: int) -> np.ndarray:
    """Row-stochastic matrix A (out_size, in_size) s.t. y = A @ x reproduces
    torch.nn.Upsample(mode='bilinear', align_corners=True) along one axis."""
    A = np.zeros((out_size, in_size), dtype=np.float32)
    if out_size == 1 or in_size == 1:
        A[:, 0] = 1.0
        return A
    scale = (in_size - 1) / (out_size - 1)
    for i in range(out_size):
        src = i * scale
        i0 = min(int(np.floor(src)), in_size - 1)
        i1 = min(i0 + 1, in_size - 1)
        frac = src - i0
        A[i, i0] += 1.0 - frac
        A[i, i1] += frac
    return A


def _pick_col_block(hw: int, hw_out: int, itemsize: int) -> int:
    """Lane-dense column block of K^T / output.  >= 2 blocks when possible so
    v7x's two TensorCores split K^T disjointly; keep one K^T block small."""
    col_bs = hw_out
    if col_bs % 256 == 0:          # split into (at least) two 128-multiples
        col_bs //= 2
    while col_bs % 256 == 0 and hw * col_bs * itemsize > 4 * 1024 * 1024:
        col_bs //= 2
    return col_bs


def _upsample_conv_kernel(x_ref, kt_ref, w_ref, b_ref, o_ref):
    # x_ref : (N, C_in, HW)        grid-invariant (full batch each step)
    # kt_ref: (HW, COL_BS)         column block j of kron(A_h, A_w)^T
    # w_ref : (C_out, C_in)        1x1-conv weight
    # b_ref : (C_out, 1)           bias (f32)
    # o_ref : (N, C_out, COL_BS)   lane-dense output column block
    w = w_ref[...]
    kt = kt_ref[...]
    b = b_ref[...]

    for n in range(x_ref.shape[0]):          # static unroll; N is tiny
        # Channel mix first (associativity reorder): runs at spatial extent HW.
        y = jnp.dot(w, x_ref[n], preferred_element_type=jnp.float32)   # (C_out, HW)
        # Combined bilinear upsample for this output-column block (MXU, lane-dense N).
        up = jnp.dot(y.astype(kt.dtype), kt,
                     preferred_element_type=jnp.float32)                # (C_out, COL_BS)
        o_ref[n] = (up + b).astype(o_ref.dtype)                         # f32 epilogue


def upsample_conv(x, w_conv, b_conv, scale=(2, 2), compute_dtype=None):
    """x: (N, C_in, H, W); w_conv: (C_out, C_in); b_conv: (C_out,).

    compute_dtype: dtype of the MXU operands (e.g. jnp.bfloat16 on v6e/v7x to
    halve the dominant K^T HBM stream).  Accumulation/epilogue are always f32.
    Default: x.dtype (exact-ish f32 path, matches the PyTorch module).
    """
    n, c_in, h, w = x.shape
    c_out = w_conv.shape[0]
    h_out, w_out = h * int(scale[0]), w * int(scale[1])
    hw, hw_out = h * w, h_out * w_out

    if compute_dtype is None:
        compute_dtype = x.dtype
    itemsize = jnp.dtype(compute_dtype).itemsize
    out_itemsize = jnp.dtype(x.dtype).itemsize

    # Combined separable -> Kronecker upsample matrix, transposed so the kernel
    # never transposes anything:  up = y @ K^T.
    ah = _bilinear_matrix(h, h_out)                              # (H_out, H)
    aw = _bilinear_matrix(w, w_out)                              # (W_out, W)
    kt = jnp.asarray(np.kron(ah, aw).T, dtype=compute_dtype)     # (HW, HW_out)

    # Lane-dense operands: flatten spatial dims in the wrapper, not the kernel.
    x2 = x.reshape(n, c_in, hw).astype(compute_dtype)
    w2 = w_conv.astype(compute_dtype)
    b2 = b_conv.reshape(c_out, 1).astype(jnp.float32)

    col_bs = _pick_col_block(hw, hw_out, itemsize)
    num_col_blocks = hw_out // col_bs
    assert num_col_blocks * col_bs == hw_out

    # Advisory cost hint (channel matmul is recomputed once per column block;
    # every K^T column block is fetched exactly once).
    flops = int(num_col_blocks * n * 2 * c_out * c_in * hw
                + n * 2 * c_out * hw * hw_out)
    bytes_accessed = int(
        n * c_in * hw * itemsize             # x
        + hw * hw_out * itemsize             # K^T (disjoint blocks, once each)
        + c_out * c_in * itemsize            # conv weight
        + c_out * 4                          # bias (f32)
        + n * c_out * hw_out * out_itemsize  # output
    )

    out = pl.pallas_call(
        _upsample_conv_kernel,
        out_shape=jax.ShapeDtypeStruct((n, c_out, hw_out), x.dtype),
        grid_spec=pltpu.PrefetchScalarGridSpec(
            num_scalar_prefetch=0,
            grid=(num_col_blocks,),                        # column blocks of HW_out
            in_specs=[
                pl.BlockSpec((n, c_in, hw), lambda j: (0, 0, 0)),   # x (invariant)
                pl.BlockSpec((hw, col_bs), lambda j: (0, j)),       # K^T column block
                pl.BlockSpec((c_out, c_in), lambda j: (0, 0)),      # conv weight
                pl.BlockSpec((c_out, 1), lambda j: (0, 0)),         # bias
            ],
            out_specs=pl.BlockSpec((n, c_out, col_bs), lambda j: (0, 0, j)),
        ),
        compiler_params=pltpu.CompilerParams(
            dimension_semantics=("parallel",),             # v7x: disjoint K^T halves per core
            vmem_limit_bytes=32 * 1024 * 1024,
        ),
        cost_estimate=pl.CostEstimate(
            flops=flops, transcendentals=0, bytes_accessed=bytes_accessed),
    )(x2, kt, w2, b2)

    return out.reshape(n, c_out, h_out, w_out)


if __name__ == "__main__":
    # Small shapes consistent with the module: N=2, C_in=4, C_out=8, H=W=16.
    key = jax.random.PRNGKey(0)
    kx, kw, kb = jax.random.split(key, 3)

    N, C_IN, C_OUT, H, W = 2, 4, 8, 16, 16
    x = jax.random.normal(kx, (N, C_IN, H, W), dtype=jnp.float32)

    # Deterministic conv params (PyTorch-like uniform init, fan_in = C_in*1*1).
    bound = 1.0 / np.sqrt(C_IN)
    w_conv = jax.random.uniform(kw, (C_OUT, C_IN), jnp.float32, -bound, bound)
    b_conv = jax.random.uniform(kb, (C_OUT,), jnp.float32, -bound, bound)

    out = upsample_conv(x, w_conv, b_conv, scale=(2, 2))
    out = jax.block_until_ready(out)
    assert out.shape == (N, C_OUT, 2 * H, 2 * W)

    # Pure-JAX reference (separable form) to sanity-check the kernel.
    ah = jnp.asarray(_bilinear_matrix(H, 2 * H))
    aw = jnp.asarray(_bilinear_matrix(W, 2 * W))
    ref_up = jnp.einsum('oh,nchw,pw->ncop', ah, x, aw)
    ref = jnp.einsum('kc,ncop->nkop', w_conv, ref_up) + b_conv[None, :, None, None]
    np.testing.assert_allclose(np.asarray(out), np.asarray(ref),
                               rtol=1e-5, atol=1e-5)

    print("KERNEL_OK")
</pallas_src>

<mosaic_0001>
module attributes {stable_mosaic.version = 11 : i64} {
  func.func @_upsample_conv_kernel(%arg0: i32, %arg1: memref<2x4x256xf32, #tpu.memory_space<vmem>>, %arg2: memref<256x512xf32, #tpu.memory_space<vmem>>, %arg3: memref<8x4xf32, #tpu.memory_space<vmem>>, %arg4: memref<8x1xf32, #tpu.memory_space<vmem>>, %arg5: memref<2x8x512xf32, #tpu.memory_space<vmem>>) attributes {dimension_semantics = [#tpu.dimension_semantics<parallel>], iteration_bounds = array<i64: 2>, scalar_prefetch = 0 : i64, scratch_operands = 0 : i64, tpu.core_type = #tpu.core_type<tc>, window_params = [{pipeline_mode = #tpu.pipeline_mode<synchronous>, transform_indices = @transform_0, window_bounds = array<i64: 2, 4, 256>}, {transform_indices = @transform_1, window_bounds = array<i64: 256, 512>}, {pipeline_mode = #tpu.pipeline_mode<synchronous>, transform_indices = @transform_2, window_bounds = array<i64: 8, 4>}, {pipeline_mode = #tpu.pipeline_mode<synchronous>, transform_indices = @transform_3, window_bounds = array<i64: 8, 1>}, {transform_indices = @transform_4, window_bounds = array<i64: 2, 8, 512>}]} {
    %c0 = arith.constant 0 : index
    %c0_0 = arith.constant 0 : index
    %0 = vector.load %arg3[%c0, %c0_0] : memref<8x4xf32, #tpu.memory_space<vmem>>, vector<8x4xf32>
    %c0_1 = arith.constant 0 : index
    %c0_2 = arith.constant 0 : index
    %1 = vector.load %arg2[%c0_1, %c0_2] : memref<256x512xf32, #tpu.memory_space<vmem>>, vector<256x512xf32>
    %c0_3 = arith.constant 0 : index
    %c0_4 = arith.constant 0 : index
    %2 = vector.load %arg4[%c0_3, %c0_4] : memref<8x1xf32, #tpu.memory_space<vmem>>, vector<8x1xf32>
    %c0_5 = arith.constant 0 : index
    %c0_6 = arith.constant 0 : index
    %c0_7 = arith.constant 0 : index
    %3 = vector.load %arg1[%c0_5, %c0_6, %c0_7] : memref<2x4x256xf32, #tpu.memory_space<vmem>>, vector<1x4x256xf32>
    %4 = vector.shape_cast %3 : vector<1x4x256xf32> to vector<4x256xf32>
    %cst = arith.constant dense<0.000000e+00> : vector<8x256xf32>
    %5 = tpu.matmul %0, %4, %cst {dimension_numbers = #tpu.dot_dimension_numbers<[1], [0], [0], [1], [0, 0, 1, 1], [], []>} : vector<8x4xf32>, vector<4x256xf32>, vector<8x256xf32> -> vector<8x256xf32>
    %cst_8 = arith.constant dense<0.000000e+00> : vector<8x512xf32>
    %6 = tpu.matmul %5, %1, %cst_8 {dimension_numbers = #tpu.dot_dimension_numbers<[1], [0], [0], [1], [0, 0, 1, 1], [], []>} : vector<8x256xf32>, vector<256x512xf32>, vector<8x512xf32> -> vector<8x512xf32>
    %7 = vector.broadcast %2 : vector<8x1xf32> to vector<8x512xf32>
    %8 = arith.addf %6, %7 : vector<8x512xf32>
    %c0_9 = arith.constant 0 : index
    %c0_10 = arith.constant 0 : index
    %c0_11 = arith.constant 0 : index
    %9 = vector.load %arg5[%c0_9, %c0_10, %c0_11] : memref<2x8x512xf32, #tpu.memory_space<vmem>>, vector<1x8x512xf32>
    %10 = vector.shape_cast %9 : vector<1x8x512xf32> to vector<8x512xf32>
    %11 = vector.shape_cast %8 : vector<8x512xf32> to vector<1x8x512xf32>
    tpu.vector_store %arg5[%c0_9, %c0_10, %c0_11], %11 {strides = array<i32>} : memref<2x8x512xf32, #tpu.memory_space<vmem>>, vector<1x8x512xf32>,
    %c1 = arith.constant 1 : index
    %c0_12 = arith.constant 0 : index
    %c0_13 = arith.constant 0 : index
    %12 = vector.load %arg1[%c1, %c0_12, %c0_13] : memref<2x4x256xf32, #tpu.memory_space<vmem>>, vector<1x4x256xf32>
    %13 = vector.shape_cast %12 : vector<1x4x256xf32> to vector<4x256xf32>
    %cst_14 = arith.constant dense<0.000000e+00> : vector<8x256xf32>
    %14 = tpu.matmul %0, %13, %cst_14 {dimension_numbers = #tpu.dot_dimension_numbers<[1], [0], [0], [1], [0, 0, 1, 1], [], []>} : vector<8x4xf32>, vector<4x256xf32>, vector<8x256xf32> -> vector<8x256xf32>
    %cst_15 = arith.constant dense<0.000000e+00> : vector<8x512xf32>
    %15 = tpu.matmul %14, %1, %cst_15 {dimension_numbers = #tpu.dot_dimension_numbers<[1], [0], [0], [1], [0, 0, 1, 1], [], []>} : vector<8x256xf32>, vector<256x512xf32>, vector<8x512xf32> -> vector<8x512xf32>
    %16 = vector.broadcast %2 : vector<8x1xf32> to vector<8x512xf32>
    %17 = arith.addf %15, %16 : vector<8x512xf32>
    %c1_16 = arith.constant 1 : index
    %c0_17 = arith.constant 0 : index
    %c0_18 = arith.constant 0 : index
    %18 = vector.load %arg5[%c1_16, %c0_17, %c0_18] : memref<2x8x512xf32, #tpu.memory_space<vmem>>, vector<1x8x512xf32>
    %19 = vector.shape_cast %18 : vector<1x8x512xf32> to vector<8x512xf32>
    %20 = vector.shape_cast %17 : vector<8x512xf32> to vector<1x8x512xf32>
    tpu.vector_store %arg5[%c1_16, %c0_17, %c0_18], %20 {strides = array<i32>} : memref<2x8x512xf32, #tpu.memory_space<vmem>>, vector<1x8x512xf32>,
    return
  }
  func.func @transform_0(%arg0: i32) -> (i32, i32, i32) {
    %c0_i32 = arith.constant 0 : i32
    %c0_i32_0 = arith.constant 0 : i32
    %c0_i32_1 = arith.constant 0 : i32
    %c0_i32_2 = arith.constant 0 : i32
    return %c0_i32, %c0_i32_0, %c0_i32_1 : i32, i32, i32
  }
  func.func @transform_1(%arg0: i32) -> (i32, i32) {
    %c0_i32 = arith.constant 0 : i32
    %c0_i32_0 = arith.constant 0 : i32
    return %c0_i32, %arg0 : i32, i32
  }
  func.func @transform_2(%arg0: i32) -> (i32, i32) {
    %c0_i32 = arith.constant 0 : i32
    %c0_i32_0 = arith.constant 0 : i32
    %c0_i32_1 = arith.constant 0 : i32
    return %c0_i32, %c0_i32_0 : i32, i32
  }
  func.func @transform_3(%arg0: i32) -> (i32, i32) {
    %c0_i32 = arith.constant 0 : i32
    %c0_i32_0 = arith.constant 0 : i32
    %c0_i32_1 = arith.constant 0 : i32
    return %c0_i32, %c0_i32_0 : i32, i32
  }
  func.func @transform_4(%arg0: i32) -> (i32, i32, i32) {
    %c0_i32 = arith.constant 0 : i32
    %c0_i32_0 = arith.constant 0 : i32
    %c0_i32_1 = arith.constant 0 : i32
    return %c0_i32, %c0_i32_0, %arg0 : i32, i32, i32
  }
}

</mosaic_0001>

<bundles_post_ra>
// kernel: tpu_custom_call.1
= control target key start
LH: loop header
LB: loop body
LE: loop exit
PB: predicated region body
PF: predicated region fallthrough
CT: control target
= control target key end

     0   :  { %9 = vsyncpa [#allocation3], 0  ;;  %s1895_s0 = inlined_call_operand.vmem [shape: f32[2,4,256], index: 0, kind: input, shape index: {}]   ;;  %s1896_s1 = inlined_call_operand.hbm [shape: f32[256,1024], index: 1, kind: input, shape index: {}]   ;;  %s1897_s2 = inlined_call_operand.vmem [shape: f32[8,4], index: 2, kind: input, shape index: {}]   ;;  %s1898_s3 = inlined_call_operand.vmem [shape: f32[8,1], index: 3, kind: input, shape index: {}]   ;;  %s1899_s4 = inlined_call_operand.hbm [shape: f32[2,8,1024], index: 4, kind: output, shape index: {}]  }
   0x1   :  { %11 = vsyncpa [#allocation3 + $0x1], 0 }
   0x2   :  { %12 = vsyncpa [#allocation4], 0 }
   0x3   :  { %14 = vsyncpa [#allocation4 + $0x1], 0  ;;  %s1090_s15 = smov 0   ;;  %s1092_s16 = smov 0  }
   0x4   :  { %s1094_s17 = smov 0   ;;  %s1096_s18 = smov 0  }
   0x5 LB: > { %s1111_s19 = sadd.s32 4294967295, %s1056_s18   ;;  %s877_s20 = sadd.s32 4294967294, %s1056_s18   ;;  %s1056_s18 = sphi %s1096_s18, %s2121_s18   ;;  %s1052_s17 = sphi %s1094_s17, %s2120_s17   ;;  %s1048_s16 = sphi %s1092_s16, %s2119_s16   ;;  %s1044_s15 = sphi %s1090_s15, %s2118_s15  }
   0x6   : > { %s1115_s21 = sadd.s32 1, %s1056_s18   ;;  %s48_s22 = sadd.s32 1, %s1052_s17 }
   0x7   : > { %s45_s23 = ssub.s32 %s1056_s18, %s1115_s21  ;;  %p55_p0 = scmp.ne.s32.totalorder %s1052_s17, %s1048_s16 }
   0x8   : > { %p46_p1 = scmp.eq.s32.totalorder %s45_s23, 0  ;;  %p56_p2 = scmp.eq.s32.totalorder %s1056_s18, 0 }
   0x9   : > { %p61_p3 = scmp.ne.s32.totalorder %s1048_s16, %s1044_s15  ;;  %p62_p4 = scmp.eq.s32.totalorder %s1111_s19, 0 }
   0xa   : > { %s1127_s24 = scalar_select %p46_p1, %s1052_s17, %s48_s22  }
   0xb   : > { %p1129_p5 = por %p56_p2, %p55_p0  ;;  %p1133_p6 = por %p62_p4, %p61_p3 }
   0xc   : > { %p127_p7 = scmp.eq.s32.totalorder %s1111_s19, 1  ;;  %p133_p8 = scmp.eq.s32.totalorder %s877_s20, 1 }
   0xd   : > { %p879_p9 = scmp.ge.s32.totalorder %s1056_s18, 2  ;;  %p918_p10 = scmp.lt.s32.totalorder %s1056_s18, 2 }
   0xe   : > { %p1140_p11 = por %p127_p7, %p55_p0  ;;  %p1144_p12 = por %p133_p8, %p61_p3 }
   0xf   : > { %s162_s29 = sand.u32 1, %s1052_s17   ;;  %s904_s30 = sshll.u32 %s1056_s18, 5 }
  0x10   : > { %s880_s5 = sshll.u32 %s162_s29, 10  ;;  %s171_s8 = scalar_lea.hbm %s1896_s1, %s904_s30 }
  0x11   : > { %s172_s9 = sshll.u32 %s171_s8, 4  ;;  %s166_s10 = scalar_lea.vmem [#allocation2], %s880_s5  ;;  %s173_s9 = int_to_ptr.hbm [resolvable:$true] %s172_s9 }
  0x12   : > { %s174_s11 = sshll.u32 %s166_s10, 4  ;;  %p1155_p13 = pnand %p918_p10, %p1129_p5  ;;  %s175_s11 = int_to_ptr.vmem [resolvable:$true] %s174_s11 }
  0x13   : > { %p883_p0 = scmp.ge.s32.totalorder %s1056_s18, 1  ;;  %s163_s13 = scalar_lea.sflag [#allocation3], %s162_s29 }
  0x14   : > { %s960_s14 = sshra.s32 %s173_s9, 4  ;;  %p964_p2 = pneg %p1155_p13  ;;  %s961_s14 = int_to_ptr.hbm [resolvable:$true] %s960_s14 }
  0x15   : > { %s962_s20 = scalar_lea.hbm %s961_s14, 1024  ;;  %s967_s30 = scalar_lea.hbm %s1896_s1, 2048 }
  0x16   : > { %p963_p1 = scmp.ne.s32.totalorder %s961_s14, %s962_s20  ;;  %p968_p5 = scmp.lt.s32.totalorder %s961_s14, %s1896_s1 }
  0x17   : > { %p969_p7 = scmp.lt.s32.totalorder %s967_s30, %s962_s20 }
  0x18   : > { %p965_p3 = pnand %p964_p2, %p963_p1 }
  0x19   : > { %p970_p8 = por %p969_p7, %p968_p5 }
  0x1a   : > { %p966_p4 = pneg %p965_p3 }
  0x1c   : > { %p971_p10 = pnand %p970_p8, %p966_p4 }
  0x1e   : > { %974 = shalt.err (!%p971_p10)
}
  0x1f   : > { %s1058_s29 = smov 1024   ;;  %s1059_s6 = smov 512  }
  0x20   : > { %s1060_s7 = smov 32   ;;  %p182_p1 = scmp.lt.s32.totalorder %s1056_s18, 3 }
  0x21   : > { %913 = dma.hbm_to_vmem [thread:$0]  (!%p1155_p13), %s173_s9, 16384, %s175_s11, %s163_s13, %s1058_s29, %s1059_s6, %s1060_s7  }
  0x22   : > { %p183_p2 = pnand %p883_p0, %p182_p1 }
  0x24   : > { %186 = sbr.rel (%p183_p2) target bundleno = 478 (0x1de), region = 36 }
  0x29   : > { %s1174_s8 = sand.u32 1, %s1048_s16  }
  0x2a   : > { %s884_s10 = sshll.u32 %s1174_s8, 10  ;;  %s189_s14 = scalar_lea.sflag [#allocation3], %s1174_s8 }
  0x2b   : > { %s1178_s20 = scalar_lea.vmem [#allocation2], %s884_s10 }
  0x2c   : > { %1035 = dma.done.wait (%p1133_p6), %s189_s14, 16384  }
  0x2d   : > { %1037 = vsyncadd (%p1133_p6), %s189_s14, 4294950912  ;;  %v350_v0 = vld [vmem:[%s1895_s0] sm:$0xff]  ;;  %v1188_v1 = vld [vmem:[%s1178_s20 + $0x1e0] sm:$0xff]  ;;  %vm359_vm0 = vcmask 1043456   ;;  %vm355_vm1 = vcmask 31744   ;;  %s885_s25 = sshll.u32 %s1174_s8, 6 }
  0x2e   : > { %352 = vst [vmem:[#allocation1] ss:$2 sm:$0xff] %v350_v0  ;;  %v1191_v2 = vld [vmem:[%s1178_s20 + $0x3e0] sm:$0xff]  ;;  %409 = vmatpush.msra.mxu2 %v1188_v1  ;;  %v1223_v10 = vld [vmem:[%s1897_s2] sm:$0xff]  ;;  %v1226_v11 = vld [vmem:[%s1178_s20 + $0x1e8] sm:$0xff]  ;;  %s1851_s5 = scalar_lea.vmem [#allocation5], %s885_s25 }
  0x2f   : > { %429 = vmatpush.msra.mxu3 %v1191_v2  ;;  %v1196_v3 = vld [vmem:[%s1178_s20 + $0x1c0] sm:$0xff]  ;;  %v1229_v12 = vld [vmem:[%s1178_s20 + $0x3e8] sm:$0xff]  ;;  %v1430_v63 = vld [vmem:[%s1178_s20 + $0x1f0] sm:$0xff]  ;;  %s905_s29 = sshll.u32 %s1111_s19, 5  ;;  %s801_s14 = sshll.u32 %s1851_s5, 4  ;;  %s802_s14 = int_to_ptr.vmem [resolvable:$true] %s801_s14 }
  0x30   : > { %v1199_v4 = vld [vmem:[%s1178_s20 + $0x3c0] sm:$0xff]  ;;  %410 = vmatpush.msra.mxu2 %v1196_v3  ;;  %v1246_v17 = vld [vmem:[%s1178_s20 + $0x1c8] sm:$0xff]  ;;  %1983 = vst [vmem:[#allocation15_spill] sm:$0xff] %v1430_v63  ;;  %v1433_v0 = vld [vmem:[%s1178_s20 + $0x3f0] sm:$0xff]  ;;  %s800_s10 = scalar_lea.hbm %s1899_s4, %s905_s29  ;;  %s789_s19 = scalar_lea.sflag [#allocation4], %s1174_s8 }
  0x31   : > { %v1202_v5 = vld [vmem:[%s1178_s20 + $0x1a0] sm:$0xff]  ;;  %430 = vmatpush.msra.mxu3 %v1199_v4  ;;  %v1249_v18 = vld [vmem:[%s1178_s20 + $0x3c8] sm:$0xff]  ;;  %1984 = vst [vmem:[#allocation16_spill] sm:$0xff] %v1433_v0  ;;  %s1010_s13 = scalar_lea.hbm %s1899_s4, 128 }
  0x32   : > { %v1207_v6 = vld [vmem:[%s1178_s20 + $0x3a0] sm:$0xff]  ;;  %411 = vmatpush.msra.mxu2 %v1202_v5  ;;  %v1260_v21 = vld [vmem:[%s1178_s20 + $0x1a8] sm:$0xff] }
  0x33   : > { %v1210_v7 = vld [vmem:[%s1178_s20 + $0x180] sm:$0xff]  ;;  %431 = vmatpush.msra.mxu3 %v1207_v6  ;;  %v1263_v22 = vld [vmem:[%s1178_s20 + $0x3a8] sm:$0xff] }
  0x34   : > { %v1213_v8 = vld [vmem:[%s1178_s20 + $0x380] sm:$0xff]  ;;  %412 = vmatpush.msra.mxu2 %v1210_v7  ;;  %v1276_v25 = vld [vmem:[%s1178_s20 + $0x188] sm:$0xff] }
  0x35   : > { %v890_v9 = vld [vmem:[%s1895_s0 + $0x8] sm:$0xff]  ;;  %v353_v13 = vld.sshfl [vmem:[#allocation1] sm:$0xff pattern:$0x75316420]  ;;  %432 = vmatpush.msra.mxu3 %v1213_v8  ;;  %v1279_v26 = vld [vmem:[%s1178_s20 + $0x388] sm:$0xff] }
  0x36   : > { %v354_v14 = vld.sshfl [vmem:[#allocation1 + $0x8] sm:$0xff pattern:$0x75316420]  ;;  %886 = vmatpush.msk.msra.mxu0 %vm359_vm0, %v353_v13  ;;  %v1292_v29 = vld [vmem:[%s1178_s20 + $0x168] sm:$0xff] }
  0x37   : > { %888 = vmatpush.msk.msra.mxu1 %vm359_vm0, %v354_v14  ;;  %576 = vst [vmem:[#allocation1] ss:$2 sm:$0xff] %v890_v9  ;;  %v1236_v15 = vld [vmem:[%s1178_s20 + $0x160] sm:$0xff]  ;;  %887 = vmatmul.msk.f32.vlgmr.msra.gmra.mxu0 %vm355_vm1, %v1223_v10  ;;  %v1295_v30 = vld [vmem:[%s1178_s20 + $0x368] sm:$0xff]  ;;  %v1446_v14 = vld [vmem:[%s1178_s20 + $0x1d0] sm:$0xff] }
  0x38   : > { %v1239_v16 = vld [vmem:[%s1178_s20 + $0x360] sm:$0xff]  ;;  %889 = vmatmul.msk.f32.vlgmr.msra.gmra.mxu1 %vm355_vm1, %v1223_v10  ;;  %449 = vmatpush.msrb.mxu0 %v1226_v11  ;;  %v1308_v33 = vld [vmem:[%s1178_s20 + $0x148] sm:$0xff]  ;;  %1987 = vst [vmem:[#allocation19_spill] sm:$0xff] %v1446_v14 }
  0x39   : > { %469 = vmatpush.msrb.mxu1 %v1229_v12  ;;  %v1254_v19 = vld [vmem:[%s1178_s20 + $0x140] sm:$0xff]  ;;  %413 = vmatpush.msra.mxu2 %v1236_v15  ;;  %v1311_v34 = vld [vmem:[%s1178_s20 + $0x348] sm:$0xff] }
  0x3a   : > { %v1257_v20 = vld [vmem:[%s1178_s20 + $0x340] sm:$0xff]  ;;  %433 = vmatpush.msra.mxu3 %v1239_v16  ;;  %450 = vmatpush.msrb.mxu0 %v1246_v17  ;;  %v1324_v37 = vld [vmem:[%s1178_s20 + $0x128] sm:$0xff] }
  0x3b   : > { %470 = vmatpush.msrb.mxu1 %v1249_v18  ;;  %v1270_v23 = vld [vmem:[%s1178_s20 + $0x120] sm:$0xff]  ;;  %414 = vmatpush.msra.mxu2 %v1254_v19  ;;  %v1327_v38 = vld [vmem:[%s1178_s20 + $0x328] sm:$0xff] }
  0x3c   : > { %v1273_v24 = vld [vmem:[%s1178_s20 + $0x320] sm:$0xff]  ;;  %434 = vmatpush.msra.mxu3 %v1257_v20  ;;  %451 = vmatpush.msrb.mxu0 %v1260_v21  ;;  %v1340_v41 = vld [vmem:[%s1178_s20 + $0x108] sm:$0xff] }
  0x3d   : > { %471 = vmatpush.msrb.mxu1 %v1263_v22  ;;  %v1286_v27 = vld [vmem:[%s1178_s20 + $0x100] sm:$0xff]  ;;  %415 = vmatpush.msra.mxu2 %v1270_v23  ;;  %v1343_v42 = vld [vmem:[%s1178_s20 + $0x308] sm:$0xff] }
  0x3e   : > { %v1289_v28 = vld [vmem:[%s1178_s20 + $0x300] sm:$0xff]  ;;  %435 = vmatpush.msra.mxu3 %v1273_v24  ;;  %452 = vmatpush.msrb.mxu0 %v1276_v25  ;;  %v1356_v45 = vld [vmem:[%s1178_s20 + $0xe8] sm:$0xff] }
  0x3f   : > { %472 = vmatpush.msrb.mxu1 %v1279_v26  ;;  %v1302_v31 = vld [vmem:[%s1178_s20 + $0xe0] sm:$0xff]  ;;  %416 = vmatpush.msra.mxu2 %v1286_v27  ;;  %v1359_v46 = vld [vmem:[%s1178_s20 + $0x2e8] sm:$0xff] }
  0x40   : > { %v1305_v32 = vld [vmem:[%s1178_s20 + $0x2e0] sm:$0xff]  ;;  %436 = vmatpush.msra.mxu3 %v1289_v28  ;;  %453 = vmatpush.msrb.mxu0 %v1292_v29  ;;  %v1372_v49 = vld [vmem:[%s1178_s20 + $0xc8] sm:$0xff] }
  0x41   : > { %473 = vmatpush.msrb.mxu1 %v1295_v30  ;;  %v1318_v35 = vld [vmem:[%s1178_s20 + $0xc0] sm:$0xff]  ;;  %417 = vmatpush.msra.mxu2 %v1302_v31  ;;  %v1375_v50 = vld [vmem:[%s1178_s20 + $0x2c8] sm:$0xff] }
  0x42   : > { %v1321_v36 = vld [vmem:[%s1178_s20 + $0x2c0] sm:$0xff]  ;;  %437 = vmatpush.msra.mxu3 %v1305_v32  ;;  %454 = vmatpush.msrb.mxu0 %v1308_v33  ;;  %v1388_v53 = vld [vmem:[%s1178_s20 + $0xa8] sm:$0xff] }
  0x43   : > { %474 = vmatpush.msrb.mxu1 %v1311_v34  ;;  %v1334_v39 = vld [vmem:[%s1178_s20 + $0xa0] sm:$0xff]  ;;  %418 = vmatpush.msra.mxu2 %v1318_v35  ;;  %v1391_v54 = vld [vmem:[%s1178_s20 + $0x2a8] sm:$0xff] }
  0x44   : > { %v1337_v40 = vld [vmem:[%s1178_s20 + $0x2a0] sm:$0xff]  ;;  %438 = vmatpush.msra.mxu3 %v1321_v36  ;;  %455 = vmatpush.msrb.mxu0 %v1324_v37  ;;  %v1404_v57 = vld [vmem:[%s1178_s20 + $0x88] sm:$0xff] }
  0x45   : > { %475 = vmatpush.msrb.mxu1 %v1327_v38  ;;  %v1350_v43 = vld [vmem:[%s1178_s20 + $0x80] sm:$0xff]  ;;  %419 = vmatpush.msra.mxu2 %v1334_v39  ;;  %v1407_v58 = vld [vmem:[%s1178_s20 + $0x288] sm:$0xff] }
  0x46   : > { %v1353_v44 = vld [vmem:[%s1178_s20 + $0x280] sm:$0xff]  ;;  %439 = vmatpush.msra.mxu3 %v1337_v40  ;;  %456 = vmatpush.msrb.mxu0 %v1340_v41  ;;  %1978 = vst [vmem:[#allocation10_spill] sm:$0xff] %v1407_v58  ;;  %v1420_v61 = vld [vmem:[%s1178_s20 + $0x68] sm:$0xff] }
  0x47   : > { %476 = vmatpush.msrb.mxu1 %v1343_v42  ;;  %v1366_v47 = vld [vmem:[%s1178_s20 + $0x60] sm:$0xff]  ;;  %420 = vmatpush.msra.mxu2 %v1350_v43  ;;  %1981 = vst [vmem:[#allocation13_spill] sm:$0xff] %v1420_v61  ;;  %v1423_v62 = vld [vmem:[%s1178_s20 + $0x268] sm:$0xff] }
  0x48   : > { %v1369_v48 = vld [vmem:[%s1178_s20 + $0x260] sm:$0xff]  ;;  %440 = vmatpush.msra.mxu3 %v1353_v44  ;;  %457 = vmatpush.msrb.mxu0 %v1356_v45  ;;  %1982 = vst [vmem:[#allocation14_spill] sm:$0xff] %v1423_v62  ;;  %v1436_v9 = vld [vmem:[%s1178_s20 + $0x48] sm:$0xff] }
  0x49   : > { %477 = vmatpush.msrb.mxu1 %v1359_v46  ;;  %v1382_v51 = vld [vmem:[%s1178_s20 + $0x40] sm:$0xff]  ;;  %421 = vmatpush.msra.mxu2 %v1366_v47  ;;  %1985 = vst [vmem:[#allocation17_spill] sm:$0xff] %v1436_v9  ;;  %v1439_v13 = vld [vmem:[%s1178_s20 + $0x248] sm:$0xff] }
  0x4a   : > { %v1385_v52 = vld [vmem:[%s1178_s20 + $0x240] sm:$0xff]  ;;  %441 = vmatpush.msra.mxu3 %v1369_v48  ;;  %458 = vmatpush.msrb.mxu0 %v1372_v49  ;;  %1986 = vst [vmem:[#allocation18_spill] sm:$0xff] %v1439_v13 }
  0x4b   : > { %478 = vmatpush.msrb.mxu1 %v1375_v50  ;;  %v1398_v55 = vld [vmem:[%s1178_s20 + $0x20] sm:$0xff]  ;;  %422 = vmatpush.msra.mxu2 %v1382_v51 }
  0x4c   : > { %1976 = vst [vmem:[#allocation8_spill] sm:$0xff] %v1398_v55  ;;  %v1401_v56 = vld [vmem:[%s1178_s20 + $0x220] sm:$0xff]  ;;  %442 = vmatpush.msra.mxu3 %v1385_v52  ;;  %459 = vmatpush.msrb.mxu0 %v1388_v53 }
  0x4d   : > { %1977 = vst [vmem:[#allocation9_spill] sm:$0xff] %v1401_v56  ;;  %479 = vmatpush.msrb.mxu1 %v1391_v54  ;;  %v1414_v59 = vld [vmem:[%s1178_s20] sm:$0xff]  ;;  %423 = vmatpush.msra.mxu2 %v1398_v55  ;;  %v1452_v55 = vld [vmem:[%s1178_s20 + $0x28] sm:$0xff] }
  0x4e   : > { %1979 = vst [vmem:[#allocation11_spill] sm:$0xff] %v1414_v59  ;;  %v1417_v60 = vld [vmem:[%s1178_s20 + $0x200] sm:$0xff]  ;;  %443 = vmatpush.msra.mxu3 %v1401_v56  ;;  %460 = vmatpush.msrb.mxu0 %v1404_v57  ;;  %v1449_v56 = vld [vmem:[%s1178_s20 + $0x3d0] sm:$0xff] }
  0x4f   : > { %1980 = vst [vmem:[#allocation12_spill] sm:$0xff] %v1417_v60  ;;  %480 = vmatpush.msrb.mxu1 %v1407_v58  ;;  %424 = vmatpush.msra.mxu2 %v1414_v59  ;;  %v1455_v58 = vld [vmem:[%s1178_s20 + $0x228] sm:$0xff]  ;;  %v1465_v59 = vld [vmem:[%s1178_s20 + $0x3b0] sm:$0xff] }
  0x50   : > { %444 = vmatpush.msra.mxu3 %v1417_v60  ;;  %461 = vmatpush.msrb.mxu0 %v1420_v61  ;;  %1988 = vst [vmem:[#allocation20_spill] sm:$0xff] %v1449_v56  ;;  %v1462_v60 = vld [vmem:[%s1178_s20 + $0x1b0] sm:$0xff]  ;;  %v1471_v61 = vld [vmem:[%s1178_s20 + $0x208] sm:$0xff] }
  0x51   : > { %481 = vmatpush.msrb.mxu1 %v1423_v62  ;;  %1989 = vst [vmem:[#allocation21_spill] sm:$0xff] %v1452_v55  ;;  %489 = vmatpush.msrb.mxu2 %v1430_v63  ;;  %v1468_v62 = vld [vmem:[%s1178_s20 + $0x8] sm:$0xff]  ;;  %v1481_v63 = vld [vmem:[%s1178_s20 + $0x3f8] sm:$0xff] }
  0x52   : > { %1990 = vst [vmem:[#allocation22_spill] sm:$0xff] %v1455_v58  ;;  %509 = vmatpush.msrb.mxu3 %v1433_v0  ;;  %462 = vmatpush.msrb.mxu0 %v1436_v9  ;;  %v1478_v0 = vld [vmem:[%s1178_s20 + $0x1f8] sm:$0xff] }
  0x53   : > { %482 = vmatpush.msrb.mxu1 %v1439_v13  ;;  %1991 = vst [vmem:[#allocation23_spill] sm:$0xff] %v1462_v60  ;;  %490 = vmatpush.msrb.mxu2 %v1446_v14  ;;  %v1486_v13 = vld [vmem:[%s1178_s20 + $0x190] sm:$0xff]  ;;  %v1527_v9 = vld [vmem:[%s1178_s20 + $0x398] sm:$0xff] }
  0x54   : > { %1992 = vst [vmem:[#allocation24_spill] sm:$0xff] %v1465_v59  ;;  %510 = vmatpush.msrb.mxu3 %v1449_v56  ;;  %463 = vmatpush.msrb.mxu0 %v1452_v55  ;;  %v1489_v14 = vld [vmem:[%s1178_s20 + $0x390] sm:$0xff]  ;;  %v1494_v56 = vld [vmem:[%s1178_s20 + $0x1d8] sm:$0xff] }
  0x55   : > { %1993 = vst [vmem:[#allocation25_spill] sm:$0xff] %v1468_v62  ;;  %483 = vmatpush.msrb.mxu1 %v1455_v58  ;;  %491 = vmatpush.msrb.mxu2 %v1462_v60  ;;  %v1497_v58 = vld [vmem:[%s1178_s20 + $0x3d8] sm:$0xff]  ;;  %v1505_v60 = vld [vmem:[%s1178_s20 + $0x370] sm:$0xff] }
  0x56   : > { %1994 = vst [vmem:[#allocation26_spill] sm:$0xff] %v1471_v61  ;;  %511 = vmatpush.msrb.mxu3 %v1465_v59  ;;  %464 = vmatpush.msrb.mxu0 %v1468_v62  ;;  %v1502_v59 = vld [vmem:[%s1178_s20 + $0x170] sm:$0xff]  ;;  %v1508_v55 = vld [vmem:[%s1178_s20 + $0x1b8] sm:$0xff] }
  0x57   : > { %1995 = vst [vmem:[#allocation27_spill] sm:$0xff] %v1478_v0  ;;  %484 = vmatpush.msrb.mxu1 %v1471_v61  ;;  %v1511_v62 = vld [vmem:[%s1178_s20 + $0x3b8] sm:$0xff]  ;;  %492 = vmatpush.msrb.mxu2 %v1486_v13 }
  0x58   : > { %1996 = vst [vmem:[#allocation28_spill] sm:$0xff] %v1481_v63  ;;  %529 = vmatpush.msra.mxu0 %v1478_v0  ;;  %512 = vmatpush.msrb.mxu3 %v1489_v14  ;;  %v1521_v0 = vld [vmem:[%s1178_s20 + $0x350] sm:$0xff]  ;;  %v1524_v61 = vld [vmem:[%s1178_s20 + $0x198] sm:$0xff] }
  0x59   : > { %1997 = vst [vmem:[#allocation29_spill] sm:$0xff] %v1486_v13  ;;  %549 = vmatpush.msra.mxu1 %v1481_v63  ;;  %v1518_v63 = vld [vmem:[%s1178_s20 + $0x150] sm:$0xff]  ;;  %493 = vmatpush.msrb.mxu2 %v1502_v59 }
  0x5a   : > { %1998 = vst [vmem:[#allocation30_spill] sm:$0xff] %v1489_v14  ;;  %530 = vmatpush.msra.mxu0 %v1494_v56  ;;  %513 = vmatpush.msrb.mxu3 %v1505_v60  ;;  %v1534_v14 = vld [vmem:[%s1178_s20 + $0x130] sm:$0xff] }
  0x5b   : > { %1999 = vst [vmem:[#allocation31_spill] sm:$0xff] %v1494_v56  ;;  %550 = vmatpush.msra.mxu1 %v1497_v58  ;;  %v1537_v13 = vld [vmem:[%s1178_s20 + $0x330] sm:$0xff]  ;;  %v1543_v56 = vld [vmem:[%s1178_s20 + $0x378] sm:$0xff]  ;;  %494 = vmatpush.msrb.mxu2 %v1518_v63 }
  0x5c   : > { %2000 = vst [vmem:[#allocation32_spill] sm:$0xff] %v1497_v58  ;;  %531 = vmatpush.msra.mxu0 %v1508_v55  ;;  %v1540_v58 = vld [vmem:[%s1178_s20 + $0x178] sm:$0xff]  ;;  %514 = vmatpush.msrb.mxu3 %v1521_v0 }
  0x5d   : > { %2001 = vst [vmem:[#allocation33_spill] sm:$0xff] %v1502_v59  ;;  %551 = vmatpush.msra.mxu1 %v1511_v62  ;;  %v1553_v59 = vld [vmem:[%s1178_s20 + $0x310] sm:$0xff]  ;;  %495 = vmatpush.msrb.mxu2 %v1534_v14 }
  0x5e   : > { %2002 = vst [vmem:[#allocation34_spill] sm:$0xff] %v1505_v60  ;;  %532 = vmatpush.msra.mxu0 %v1524_v61  ;;  %v1550_v60 = vld [vmem:[%s1178_s20 + $0x110] sm:$0xff]  ;;  %515 = vmatpush.msrb.mxu3 %v1537_v13 }
  0x5f   : > { %2003 = vst [vmem:[#allocation35_spill] sm:$0xff] %v1508_v55  ;;  %552 = vmatpush.msra.mxu1 %v1527_v9  ;;  %v1559_v55 = vld [vmem:[%s1178_s20 + $0x358] sm:$0xff]  ;;  %496 = vmatpush.msrb.mxu2 %v1550_v60 }
  0x60   : > { %2004 = vst [vmem:[#allocation36_spill] sm:$0xff] %v1511_v62  ;;  %v1556_v62 = vld [vmem:[%s1178_s20 + $0x158] sm:$0xff]  ;;  %533 = vmatpush.msra.mxu0 %v1540_v58  ;;  %516 = vmatpush.msrb.mxu3 %v1553_v59 }
  0x61   : > { %2005 = vst [vmem:[#allocation37_spill] sm:$0xff] %v1518_v63  ;;  %553 = vmatpush.msra.mxu1 %v1543_v56  ;;  %v1569_v63 = vld [vmem:[%s1178_s20 + $0x2f0] sm:$0xff] }
  0x62   : > { %2006 = vst [vmem:[#allocation38_spill] sm:$0xff] %v1521_v0  ;;  %v1566_v0 = vld [vmem:[%s1178_s20 + $0xf0] sm:$0xff]  ;;  %534 = vmatpush.msra.mxu0 %v1556_v62  ;;  %517 = vmatpush.msrb.mxu3 %v1569_v63 }
  0x63   : > { %2007 = vst [vmem:[#allocation39_spill] sm:$0xff] %v1524_v61  ;;  %v1575_v61 = vld [vmem:[%s1178_s20 + $0x338] sm:$0xff]  ;;  %554 = vmatpush.msra.mxu1 %v1559_v55  ;;  %497 = vmatpush.msrb.mxu2 %v1566_v0 }
  0x64   : > { %2008 = vst [vmem:[#allocation40_spill] sm:$0xff] %v1527_v9  ;;  %v1572_v9 = vld [vmem:[%s1178_s20 + $0x138] sm:$0xff] }
  0x65   : > { %2009 = vst [vmem:[#allocation41_spill] sm:$0xff] %v1534_v14  ;;  %v1585_v14 = vld [vmem:[%s1178_s20 + $0x2d0] sm:$0xff]  ;;  %535 = vmatpush.msra.mxu0 %v1572_v9  ;;  %555 = vmatpush.msra.mxu1 %v1575_v61 }
  0x66   : > { %2010 = vst [vmem:[#allocation42_spill] sm:$0xff] %v1537_v13  ;;  %v1582_v13 = vld [vmem:[%s1178_s20 + $0xd0] sm:$0xff]  ;;  %518 = vmatpush.msrb.mxu3 %v1585_v14 }
  0x67   : > { %2011 = vst [vmem:[#allocation43_spill] sm:$0xff] %v1540_v58  ;;  %v1591_v58 = vld [vmem:[%s1178_s20 + $0x318] sm:$0xff]  ;;  %498 = vmatpush.msrb.mxu2 %v1582_v13 }
  0x68   : > { %2012 = vst [vmem:[#allocation44_spill] sm:$0xff] %v1543_v56  ;;  %v1588_v56 = vld [vmem:[%s1178_s20 + $0x118] sm:$0xff]  ;;  %556 = vmatpush.msra.mxu1 %v1591_v58 }
  0x69   : > { %2013 = vst [vmem:[#allocation45_spill] sm:$0xff] %v1550_v60  ;;  %v1601_v60 = vld [vmem:[%s1178_s20 + $0x2b0] sm:$0xff]  ;;  %536 = vmatpush.msra.mxu0 %v1588_v56 }
  0x6a   : > { %2014 = vst [vmem:[#allocation46_spill] sm:$0xff] %v1553_v59  ;;  %v1598_v59 = vld [vmem:[%s1178_s20 + $0xb0] sm:$0xff]  ;;  %519 = vmatpush.msrb.mxu3 %v1601_v60 }
  0x6b   : > { %2015 = vst [vmem:[#allocation47_spill] sm:$0xff] %v1556_v62  ;;  %v1607_v62 = vld [vmem:[%s1178_s20 + $0x2f8] sm:$0xff]  ;;  %499 = vmatpush.msrb.mxu2 %v1598_v59 }
  0x6c   : > { %2016 = vst [vmem:[#allocation48_spill] sm:$0xff] %v1559_v55  ;;  %v1604_v55 = vld [vmem:[%s1178_s20 + $0xf8] sm:$0xff]  ;;  %557 = vmatpush.msra.mxu1 %v1607_v62 }
  0x6d   : > { %2017 = vst [vmem:[#allocation49_spill] sm:$0xff] %v1566_v0  ;;  %v1617_v0 = vld [vmem:[%s1178_s20 + $0x2d8] sm:$0xff]  ;;  %537 = vmatpush.msra.mxu0 %v1604_v55 }
  0x6e   : > { %2018 = vst [vmem:[#allocation50_spill] sm:$0xff] %v1569_v63  ;;  %v1614_v63 = vld [vmem:[%s1178_s20 + $0xd8] sm:$0xff]  ;;  %558 = vmatpush.msra.mxu1 %v1617_v0 }
  0x6f   : > { %2019 = vst [vmem:[#allocation51_spill] sm:$0xff] %v1575_v61  ;;  %538 = vmatpush.msra.mxu0 %v1614_v63  ;;  %v578_v61 = vld.sshfl [vmem:[#allocation1 + $0x8] sm:$0xff pattern:$0x75316420] }
  0x70   : > { %2020 = vst [vmem:[#allocation52_spill] sm:$0xff] %v1582_v13  ;;  %v1627_v13 = vld [vmem:[%s1178_s20 + $0x2b8] sm:$0xff] }
  0x71   : > { %2021 = vst [vmem:[#allocation53_spill] sm:$0xff] %v1585_v14  ;;  %v1624_v14 = vld [vmem:[%s1178_s20 + $0xb8] sm:$0xff]  ;;  %559 = vmatpush.msra.mxu1 %v1627_v13 }
  0x72   : > { %2022 = vst [vmem:[#allocation54_spill] sm:$0xff] %v1588_v56  ;;  %539 = vmatpush.msra.mxu0 %v1624_v14  ;;  %v1689_v56 = vld [vmem:[%s1178_s20 + $0x238] sm:$0xff] }
  0x73   : > { %2023 = vst [vmem:[#allocation55_spill] sm:$0xff] %v1591_v58  ;;  %v1686_v58 = vld [vmem:[%s1178_s20 + $0x38] sm:$0xff] }
  0x74   : > { %2024 = vst [vmem:[#allocation56_spill] sm:$0xff] %v1598_v59  ;;  %v1637_v59 = vld [vmem:[%s1178_s20 + $0x290] sm:$0xff] }
  0x75   : > { %2025 = vst [vmem:[#allocation57_spill] sm:$0xff] %v1601_v60  ;;  %v1634_v60 = vld [vmem:[%s1178_s20 + $0x90] sm:$0xff]  ;;  %520 = vmatpush.msrb.mxu3 %v1637_v59 }
  0x76   : > { %2026 = vst [vmem:[#allocation58_spill] sm:$0xff] %v1604_v55  ;;  %500 = vmatpush.msrb.mxu2 %v1634_v60  ;;  %v1675_v55 = vld [vmem:[%s1178_s20 + $0x258] sm:$0xff] }
  0x77   : > { %2027 = vst [vmem:[#allocation59_spill] sm:$0xff] %v1607_v62  ;;  %v1640_v62 = vld [vmem:[%s1178_s20 + $0x98] sm:$0xff] }
  0x78   : > { %2028 = vst [vmem:[#allocation60_spill] sm:$0xff] %v1614_v63  ;;  %540 = vmatpush.msra.mxu0 %v1640_v62  ;;  %v1656_v63 = vld [vmem:[%s1178_s20 + $0x78] sm:$0xff] }
  0x79   : > { %2029 = vst [vmem:[#allocation61_spill] sm:$0xff] %v1617_v0  ;;  %v1645_v0 = vld [vmem:[%s1178_s20 + $0x298] sm:$0xff] }
  0x7a   : > { %2030 = vst [vmem:[#allocation62_spill] sm:$0xff] %v1624_v14  ;;  %560 = vmatpush.msra.mxu1 %v1645_v0  ;;  %v1653_v14 = vld [vmem:[%s1178_s20 + $0x270] sm:$0xff]  ;;  %541 = vmatpush.msra.mxu0 %v1656_v63 }
  0x7b   : > { %2031 = vst [vmem:[#allocation63_spill] sm:$0xff] %v1627_v13  ;;  %v1650_v13 = vld [vmem:[%s1178_s20 + $0x70] sm:$0xff]  ;;  %521 = vmatpush.msrb.mxu3 %v1653_v14 }
  0x7c   : > { %2032 = vst [vmem:[#allocation64_spill] sm:$0xff] %v1634_v60  ;;  %501 = vmatpush.msrb.mxu2 %v1650_v13  ;;  %v1672_v60 = vld [vmem:[%s1178_s20 + $0x58] sm:$0xff] }
  0x7d   : > { %2033 = vst [vmem:[#allocation65_spill] sm:$0xff] %v1637_v59  ;;  %v1661_v59 = vld [vmem:[%s1178_s20 + $0x278] sm:$0xff]  ;;  %542 = vmatpush.msra.mxu0 %v1672_v60 }
  0x7e   : > { %2034 = vst [vmem:[#allocation66_spill] sm:$0xff] %v1640_v62  ;;  %v1664_v62 = vld [vmem:[%s1178_s20 + $0x50] sm:$0xff]  ;;  %561 = vmatpush.msra.mxu1 %v1661_v59 }
  0x7f   : > { %2035 = vst [vmem:[#allocation67_spill] sm:$0xff] %v1645_v0  ;;  %v1667_v0 = vld [vmem:[%s1178_s20 + $0x250] sm:$0xff]  ;;  %502 = vmatpush.msrb.mxu2 %v1664_v62  ;;  %543 = vmatpush.msra.mxu0 %v1686_v58 }
  0x80   : > { %2036 = vst [vmem:[#allocation68_spill] sm:$0xff] %v1650_v13  ;;  %v1678_v13 = vld [vmem:[%s1178_s20 + $0x30] sm:$0xff]  ;;  %522 = vmatpush.msrb.mxu3 %v1667_v0  ;;  %562 = vmatpush.msra.mxu1 %v1675_v55 }
  0x81   : > { %2037 = vst [vmem:[#allocation69_spill] sm:$0xff] %v1653_v14  ;;  %v1683_v14 = vld [vmem:[%s1178_s20 + $0x230] sm:$0xff]  ;;  %503 = vmatpush.msrb.mxu2 %v1678_v13 }
  0x82   : > { %2038 = vst [vmem:[#allocation70_spill] sm:$0xff] %v1656_v63  ;;  %v1697_v63 = vld [vmem:[%s1178_s20 + $0x210] sm:$0xff]  ;;  %523 = vmatpush.msrb.mxu3 %v1683_v14  ;;  %563 = vmatpush.msra.mxu1 %v1689_v56 }
  0x83   : > { %2039 = vst [vmem:[#allocation71_spill] sm:$0xff] %v1661_v59  ;;  %v1694_v59 = vld [vmem:[%s1178_s20 + $0x10] sm:$0xff] }
  0x84   : > { %2040 = vst [vmem:[#allocation72_spill] sm:$0xff] %v1664_v62  ;;  %v1702_v62 = vld [vmem:[%s1178_s20 + $0x18] sm:$0xff]  ;;  %504 = vmatpush.msrb.mxu2 %v1694_v59  ;;  %524 = vmatpush.msrb.mxu3 %v1697_v63 }
  0x85   : > { %2041 = vst [vmem:[#allocation73_spill] sm:$0xff] %v1667_v0  ;;  %v1705_v0 = vld [vmem:[%s1178_s20 + $0x218] sm:$0xff]  ;;  %544 = vmatpush.msra.mxu0 %v1702_v62  ;;  %s803_s20 = sshll.u32 %s800_s10, 4  ;;  %s804_s20 = int_to_ptr.hbm [resolvable:$true] %s803_s20 }
  0x86   : > { %2042 = vst [vmem:[#allocation74_spill] sm:$0xff] %v1672_v60  ;;  %564 = vmatpush.msra.mxu1 %v1705_v0  ;;  %v1061_v60 = vmov 0   ;;  %s1004_s9 = sshra.s32 %s804_s20, 4  ;;  %s1005_s9 = int_to_ptr.hbm [resolvable:$true] %s1004_s9 }
  0x87   : > { %2043 = vst [vmem:[#allocation75_spill] sm:$0xff] %v1675_v55  ;;  %v349_v55 = vld [vmem:[%s1898_s3] sm:$0xff]  ;;  %959 = vset.pattern.permute.xlu0 %v1061_v60  ;;  %v2101_v60 = vld [vmem:[#allocation64_spill] sm:$0xff]  ;;  %s1006_s11 = scalar_lea.hbm %s1005_s9, 64  ;;  %p1011_p3 = scmp.lt.s32.totalorder %s1005_s9, %s1899_s4 }
  0x88   : > { %2044 = vst [vmem:[#allocation76_spill] sm:$0xff] %v1678_v13  ;;  %406 = vperm.xlu0 %959, %v349_v55   ;;  %v2098_v55 = vld [vmem:[#allocation57_spill] sm:$0xff]  ;;  %p1007_p6 = scmp.ne.s32.totalorder %s1005_s9, %s1006_s11  ;;  %p1012_p4 = scmp.lt.s32.totalorder %s1010_s13, %s1006_s11 }
  0x89   : > { %2045 = vst [vmem:[#allocation77_spill] sm:$0xff] %v1683_v14 }
  0x8a   : > { %2046 = vst [vmem:[#allocation78_spill] sm:$0xff] %v1686_v58  ;;  %v577_v58 = vld.sshfl [vmem:[#allocation1] sm:$0xff pattern:$0x75316420]  ;;  %p1008_p13 = pnand %p1007_p6, %p1140_p11  ;;  %p1013_p5 = por %p1012_p4, %p1011_p3 }
  0x8c   : > { %p1009_p0 = pneg %p1008_p13 }
  0x8e   : > { %p1014_p7 = pnand %p1013_p5, %p1009_p0 }
  0xb4   : > { %v381_v14 = vpop.f32.mrf.mxu0 }
  0xb5   : > { %v401_v13 = vpop.f32.mrf.mxu1  ;;  %425 = vmatmul.f32.vlgmr.msra.gmra.mxu2 %v381_v14  ;;  %465 = vmatmul.f32.vlgmr.msrb.gmra.mxu0 %v381_v14 }
  0xb6   : > { %445 = vmatmul.f32.vlgmr.msra.gmra.mxu3 %v401_v13  ;;  %485 = vmatmul.f32.vlgmr.msrb.gmra.mxu1 %v401_v13 }
  0xb7   : > { %891 = vmatpush.msk.msra.mxu2 %vm359_vm0, %v577_v58  ;;  %893 = vmatpush.msk.msra.mxu3 %vm359_vm0, %v578_v61  ;;  %v2100_v58 = vld [vmem:[#allocation61_spill] sm:$0xff] }
  0xb8   : > { %623 = vmatpush.msrb.mxu0 %v1188_v1  ;;  %643 = vmatpush.msrb.mxu1 %v1191_v2  ;;  %v2047_v1 = vld [vmem:[#allocation10_spill] sm:$0xff]  ;;  %v2048_v2 = vld [vmem:[#allocation8_spill] sm:$0xff]  ;;  %v2102_v61 = vld [vmem:[#allocation65_spill] sm:$0xff] }
  0xba   : > { %624 = vmatpush.msrb.mxu0 %v1196_v3  ;;  %644 = vmatpush.msrb.mxu1 %v1199_v4  ;;  %v2049_v3 = vld [vmem:[#allocation9_spill] sm:$0xff] }
  0xbb   : > { %v2050_v4 = vld [vmem:[#allocation13_spill] sm:$0xff] }
  0xbc   : > { %625 = vmatpush.msrb.mxu0 %v1202_v5  ;;  %645 = vmatpush.msrb.mxu1 %v1207_v6  ;;  %v2051_v5 = vld [vmem:[#allocation14_spill] sm:$0xff]  ;;  %v2052_v6 = vld [vmem:[#allocation11_spill] sm:$0xff] }
  0xbd   : > { %505 = vmatmul.f32.vlgmr.msrb.gmra.mxu2 %v381_v14  ;;  %545 = vmatmul.f32.vlgmr.msra.gmra.mxu0 %v381_v14  ;;  %v2105_v14 = vld [vmem:[#allocation68_spill] sm:$0xff] }
  0xbe   : > { %525 = vmatmul.f32.vlgmr.msrb.gmra.mxu3 %v401_v13  ;;  %565 = vmatmul.f32.vlgmr.msra.gmra.mxu1 %v401_v13  ;;  %v2104_v13 = vld [vmem:[#allocation63_spill] sm:$0xff] }
  0xbf   : > { %663 = vmatpush.msrb.mxu2 %v1226_v11  ;;  %683 = vmatpush.msrb.mxu3 %v1229_v12  ;;  %v2056_v11 = vld [vmem:[#allocation15_spill] sm:$0xff]  ;;  %v2057_v12 = vld [vmem:[#allocation16_spill] sm:$0xff] }
  0xc0   : > { %626 = vmatpush.msrb.mxu0 %v1210_v7  ;;  %646 = vmatpush.msrb.mxu1 %v1213_v8  ;;  %v2053_v7 = vld [vmem:[#allocation12_spill] sm:$0xff]  ;;  %v2054_v8 = vld [vmem:[#allocation17_spill] sm:$0xff] }
  0xc1   : > { %664 = vmatpush.msrb.mxu2 %v1246_v17  ;;  %684 = vmatpush.msrb.mxu3 %v1249_v18  ;;  %v2060_v17 = vld [vmem:[#allocation19_spill] sm:$0xff]  ;;  %v2061_v18 = vld [vmem:[#allocation20_spill] sm:$0xff] }
  0xc2   : > { %627 = vmatpush.msrb.mxu0 %v1236_v15  ;;  %647 = vmatpush.msrb.mxu1 %v1239_v16  ;;  %v2058_v15 = vld [vmem:[#allocation21_spill] sm:$0xff]  ;;  %v2059_v16 = vld [vmem:[#allocation22_spill] sm:$0xff] }
  0xc3   : > { %665 = vmatpush.msrb.mxu2 %v1260_v21  ;;  %685 = vmatpush.msrb.mxu3 %v1263_v22  ;;  %v2064_v21 = vld [vmem:[#allocation27_spill] sm:$0xff]  ;;  %v2065_v22 = vld [vmem:[#allocation28_spill] sm:$0xff] }
  0xc4   : > { %628 = vmatpush.msrb.mxu0 %v1254_v19  ;;  %648 = vmatpush.msrb.mxu1 %v1257_v20  ;;  %v2062_v19 = vld [vmem:[#allocation25_spill] sm:$0xff]  ;;  %v2063_v20 = vld [vmem:[#allocation26_spill] sm:$0xff] }
  0xc5   : > { %892 = vmatmul.msk.f32.vlgmr.msra.gmra.mxu2 %vm355_vm1, %v1223_v10  ;;  %686 = vmatpush.msrb.mxu3 %v1279_v26  ;;  %v2069_v26 = vld [vmem:[#allocation32_spill] sm:$0xff] }
  0xc6   : > { %894 = vmatmul.msk.f32.vlgmr.msra.gmra.mxu3 %vm355_vm1, %v1223_v10  ;;  %666 = vmatpush.msrb.mxu2 %v1276_v25  ;;  %v2055_v10 = vld [vmem:[#allocation18_spill] sm:$0xff]  ;;  %v2068_v25 = vld [vmem:[#allocation31_spill] sm:$0xff] }
  0xc7   : > { %629 = vmatpush.msrb.mxu0 %v1270_v23  ;;  %649 = vmatpush.msrb.mxu1 %v1273_v24  ;;  %v2066_v23 = vld [vmem:[#allocation23_spill] sm:$0xff]  ;;  %v2067_v24 = vld [vmem:[#allocation24_spill] sm:$0xff] }
  0xc8   : > { %667 = vmatpush.msrb.mxu2 %v1292_v29  ;;  %687 = vmatpush.msrb.mxu3 %v1295_v30  ;;  %v2072_v29 = vld [vmem:[#allocation35_spill] sm:$0xff]  ;;  %v2073_v30 = vld [vmem:[#allocation36_spill] sm:$0xff] }
  0xc9   : > { %630 = vmatpush.msrb.mxu0 %v1286_v27  ;;  %650 = vmatpush.msrb.mxu1 %v1289_v28  ;;  %v2070_v27 = vld [vmem:[#allocation29_spill] sm:$0xff]  ;;  %v2071_v28 = vld [vmem:[#allocation30_spill] sm:$0xff] }
  0xca   : > { %668 = vmatpush.msrb.mxu2 %v1308_v33  ;;  %688 = vmatpush.msrb.mxu3 %v1311_v34  ;;  %v2076_v33 = vld [vmem:[#allocation39_spill] sm:$0xff]  ;;  %v2077_v34 = vld [vmem:[#allocation40_spill] sm:$0xff] }
  0xcb   : > { %631 = vmatpush.msrb.mxu0 %v1302_v31  ;;  %651 = vmatpush.msrb.mxu1 %v1305_v32  ;;  %v2074_v31 = vld [vmem:[#allocation33_spill] sm:$0xff]  ;;  %v2075_v32 = vld [vmem:[#allocation34_spill] sm:$0xff] }
  0xcc   : > { %669 = vmatpush.msrb.mxu2 %v1324_v37  ;;  %689 = vmatpush.msrb.mxu3 %v1327_v38  ;;  %v2080_v37 = vld [vmem:[#allocation43_spill] sm:$0xff]  ;;  %v2081_v38 = vld [vmem:[#allocation44_spill] sm:$0xff] }
  0xcd   : > { %632 = vmatpush.msrb.mxu0 %v1318_v35  ;;  %652 = vmatpush.msrb.mxu1 %v1321_v36  ;;  %v2078_v35 = vld [vmem:[#allocation37_spill] sm:$0xff]  ;;  %v2079_v36 = vld [vmem:[#allocation38_spill] sm:$0xff] }
  0xce   : > { %670 = vmatpush.msrb.mxu2 %v1340_v41  ;;  %690 = vmatpush.msrb.mxu3 %v1343_v42  ;;  %v2084_v41 = vld [vmem:[#allocation47_spill] sm:$0xff]  ;;  %v2085_v42 = vld [vmem:[#allocation48_spill] sm:$0xff] }
  0xcf   : > { %633 = vmatpush.msrb.mxu0 %v1334_v39  ;;  %653 = vmatpush.msrb.mxu1 %v1337_v40  ;;  %v2082_v39 = vld [vmem:[#allocation41_spill] sm:$0xff]  ;;  %v2083_v40 = vld [vmem:[#allocation42_spill] sm:$0xff] }
  0xd0   : > { %671 = vmatpush.msrb.mxu2 %v1356_v45  ;;  %691 = vmatpush.msrb.mxu3 %v1359_v46  ;;  %v2088_v45 = vld [vmem:[#allocation51_spill] sm:$0xff]  ;;  %v2089_v46 = vld [vmem:[#allocation49_spill] sm:$0xff] }
  0xd1   : > { %634 = vmatpush.msrb.mxu0 %v1350_v43  ;;  %654 = vmatpush.msrb.mxu1 %v1353_v44  ;;  %v2086_v43 = vld [vmem:[#allocation45_spill] sm:$0xff]  ;;  %v2087_v44 = vld [vmem:[#allocation46_spill] sm:$0xff] }
  0xd2   : > { %672 = vmatpush.msrb.mxu2 %v1372_v49  ;;  %692 = vmatpush.msrb.mxu3 %v1375_v50  ;;  %v2092_v49 = vld [vmem:[#allocation55_spill] sm:$0xff]  ;;  %v2093_v50 = vld [vmem:[#allocation52_spill] sm:$0xff] }
  0xd3   : > { %635 = vmatpush.msrb.mxu0 %v1366_v47  ;;  %655 = vmatpush.msrb.mxu1 %v1369_v48  ;;  %v2090_v47 = vld [vmem:[#allocation50_spill] sm:$0xff] }
  0xd4   : > { %673 = vmatpush.msrb.mxu2 %v1388_v53  ;;  %693 = vmatpush.msrb.mxu3 %v1391_v54  ;;  %v2091_v48 = vld [vmem:[#allocation54_spill] sm:$0xff]  ;;  %v2096_v53 = vld [vmem:[#allocation59_spill] sm:$0xff]  ;;  %v2097_v54 = vld [vmem:[#allocation56_spill] sm:$0xff] }
  0xd5   : > { %636 = vmatpush.msrb.mxu0 %v1382_v51  ;;  %656 = vmatpush.msrb.mxu1 %v1385_v52  ;;  %v2094_v51 = vld [vmem:[#allocation53_spill] sm:$0xff]  ;;  %v2095_v52 = vld [vmem:[#allocation58_spill] sm:$0xff] }
  0xd6   : > { %674 = vmatpush.msrb.mxu2 %v1404_v57  ;;  %694 = vmatpush.msrb.mxu3 %v2047_v1  ;;  %v2099_v57 = vld [vmem:[#allocation60_spill] sm:$0xff]  ;;  %v2106_v1 = vld [vmem:[#allocation69_spill] sm:$0xff] }
  0xd7   : > { %637 = vmatpush.msrb.mxu0 %v2048_v2  ;;  %657 = vmatpush.msrb.mxu1 %v2049_v3  ;;  %v2107_v2 = vld [vmem:[#allocation66_spill] sm:$0xff]  ;;  %v2108_v3 = vld [vmem:[#allocation67_spill] sm:$0xff] }
  0xd8   : > { %675 = vmatpush.msrb.mxu2 %v2050_v4  ;;  %695 = vmatpush.msrb.mxu3 %v2051_v5  ;;  %v2109_v4 = vld [vmem:[#allocation72_spill] sm:$0xff]  ;;  %v2110_v5 = vld [vmem:[#allocation73_spill] sm:$0xff] }
  0xd9   : > { %638 = vmatpush.msrb.mxu0 %v2052_v6  ;;  %658 = vmatpush.msrb.mxu1 %v2053_v7  ;;  %v2111_v6 = vld [vmem:[#allocation70_spill] sm:$0xff]  ;;  %v2112_v7 = vld [vmem:[#allocation71_spill] sm:$0xff] }
  0xda   : > { %676 = vmatpush.msrb.mxu2 %v2054_v8  ;;  %696 = vmatpush.msrb.mxu3 %v2055_v10  ;;  %v2113_v8 = vld [vmem:[#allocation76_spill] sm:$0xff]  ;;  %v2114_v10 = vld [vmem:[#allocation77_spill] sm:$0xff] }
  0xdb   : > { %703 = vmatpush.msra.mxu0 %v2056_v11  ;;  %723 = vmatpush.msra.mxu1 %v2057_v12  ;;  %v2115_v11 = vld [vmem:[#allocation74_spill] sm:$0xff]  ;;  %v2116_v12 = vld [vmem:[#allocation75_spill] sm:$0xff] }
  0xdc   : > { %677 = vmatpush.msrb.mxu2 %v2058_v15  ;;  %697 = vmatpush.msrb.mxu3 %v2059_v16  ;;  %v2117_v15 = vld [vmem:[#allocation78_spill] sm:$0xff] }
  0xdd   : > { %704 = vmatpush.msra.mxu0 %v2060_v17  ;;  %724 = vmatpush.msra.mxu1 %v2061_v18 }
  0xde   : > { %678 = vmatpush.msrb.mxu2 %v2062_v19  ;;  %698 = vmatpush.msrb.mxu3 %v2063_v20 }
  0xdf   : > { %705 = vmatpush.msra.mxu0 %v2066_v23  ;;  %725 = vmatpush.msra.mxu1 %v2067_v24 }
  0xe0   : > { %743 = vmatpush.msra.mxu2 %v2064_v21  ;;  %763 = vmatpush.msra.mxu3 %v2065_v22 }
  0xe1   : > { %706 = vmatpush.msra.mxu0 %v2070_v27  ;;  %726 = vmatpush.msra.mxu1 %v2071_v28 }
  0xe2   : > { %744 = vmatpush.msra.mxu2 %v2068_v25  ;;  %764 = vmatpush.msra.mxu3 %v2069_v26 }
  0xe3   : > { %707 = vmatpush.msra.mxu0 %v2074_v31  ;;  %727 = vmatpush.msra.mxu1 %v2075_v32 }
  0xe4   : > { %745 = vmatpush.msra.mxu2 %v2072_v29  ;;  %765 = vmatpush.msra.mxu3 %v2073_v30 }
  0xe5   : > { %708 = vmatpush.msra.mxu0 %v2078_v35  ;;  %728 = vmatpush.msra.mxu1 %v2079_v36 }
  0xe6   : > { %746 = vmatpush.msra.mxu2 %v2076_v33  ;;  %766 = vmatpush.msra.mxu3 %v2077_v34 }
  0xe7   : > { %709 = vmatpush.msra.mxu0 %v2082_v39  ;;  %729 = vmatpush.msra.mxu1 %v2083_v40 }
  0xe8   : > { %747 = vmatpush.msra.mxu2 %v2080_v37  ;;  %767 = vmatpush.msra.mxu3 %v2081_v38 }
  0xe9   : > { %710 = vmatpush.msra.mxu0 %v2086_v43  ;;  %730 = vmatpush.msra.mxu1 %v2087_v44 }
  0xea   : > { %748 = vmatpush.msra.mxu2 %v2084_v41  ;;  %768 = vmatpush.msra.mxu3 %v2085_v42 }
  0xeb   : > { %711 = vmatpush.msra.mxu0 %v2089_v46  ;;  %731 = vmatpush.msra.mxu1 %v2090_v47 }
  0xec   : > { %749 = vmatpush.msra.mxu2 %v1572_v9  ;;  %769 = vmatpush.msra.mxu3 %v2088_v45  ;;  %v2103_v9 = vld [vmem:[#allocation62_spill] sm:$0xff] }
  0xed   : > { %712 = vmatpush.msra.mxu0 %v2093_v50  ;;  %732 = vmatpush.msra.mxu1 %v2094_v51 }
  0xee   : > { %750 = vmatpush.msra.mxu2 %v2091_v48  ;;  %770 = vmatpush.msra.mxu3 %v2092_v49 }
  0xef   : > { %713 = vmatpush.msra.mxu0 %v2097_v54  ;;  %733 = vmatpush.msra.mxu1 %v2098_v55 }
  0xf0   : > { %751 = vmatpush.msra.mxu2 %v2095_v52  ;;  %771 = vmatpush.msra.mxu3 %v2096_v53 }
  0xf1   : > { %714 = vmatpush.msra.mxu0 %v2101_v60  ;;  %734 = vmatpush.msra.mxu1 %v2102_v61 }
  0xf2   : > { %752 = vmatpush.msra.mxu2 %v2099_v57  ;;  %772 = vmatpush.msra.mxu3 %v2100_v58 }
  0xf3   : > { %715 = vmatpush.msra.mxu0 %v2105_v14  ;;  %735 = vmatpush.msra.mxu1 %v2106_v1 }
  0xf4   : > { %753 = vmatpush.msra.mxu2 %v2103_v9  ;;  %773 = vmatpush.msra.mxu3 %v2104_v13 }
  0xf5   : > { %716 = vmatpush.msra.mxu0 %v2109_v4  ;;  %736 = vmatpush.msra.mxu1 %v2110_v5 }
  0xf6   : > { %754 = vmatpush.msra.mxu2 %v2107_v2  ;;  %774 = vmatpush.msra.mxu3 %v2108_v3 }
  0xf7   : > { %717 = vmatpush.msra.mxu0 %v2113_v8  ;;  %737 = vmatpush.msra.mxu1 %v2114_v10 }
  0xf8   : > { %755 = vmatpush.msra.mxu2 %v2111_v6  ;;  %775 = vmatpush.msra.mxu3 %v2112_v7 }
  0xf9   : > { %718 = vmatpush.msra.mxu0 %v1694_v59  ;;  %738 = vmatpush.msra.mxu1 %v1697_v63 }
  0xfa   : > { %756 = vmatpush.msra.mxu2 %v2115_v11  ;;  %776 = vmatpush.msra.mxu3 %v2116_v12  ;;  %v407_v16 = vpop.permute.xlu0 %406 }
  0xfc   : > { %757 = vmatpush.msra.mxu2 %v2117_v15  ;;  %777 = vmatpush.msra.mxu3 %v1689_v56 }
  0xfe   : > { %758 = vmatpush.msra.mxu2 %v1702_v62  ;;  %778 = vmatpush.msra.mxu3 %v1705_v0 }
 0x132   : > { %v466_v17 = vpop.f32.mrf.mxu0 }
 0x133   : > { %v486_v18 = vpop.f32.mrf.mxu1  ;;  %v467_v19 = vadd.f32 %v466_v17, %v407_v16 }
 0x135   : > { %v487_v20 = vadd.f32 %v486_v18, %v467_v19 }
 0x137   : > { %570 = vst [vmem:[%s1851_s5 + $0x8] sm:$0xff] %v487_v20 }
 0x138   : > { %v426_v59 = vpop.f32.mrf.mxu2 }
 0x139   : > { %v446_v63 = vpop.f32.mrf.mxu3  ;;  %v427_v56 = vadd.f32 %v426_v59, %v407_v16 }
 0x13a   : > { %v546_v62 = vpop.f32.mrf.mxu0 }
 0x13b   : > { %v447_v21 = vadd.f32 %v446_v63, %v427_v56  ;;  %v547_v22 = vadd.f32 %v546_v62, %v407_v16  ;;  %v566_v0 = vpop.f32.mrf.mxu1 }
 0x13d   : > { %569 = vst [vmem:[%s1851_s5] sm:$0xff] %v447_v21  ;;  %v567_v23 = vadd.f32 %v566_v0, %v547_v22 }
 0x13f   : > { %572 = vst [vmem:[%s1851_s5 + $0x18] sm:$0xff] %v567_v23 }
 0x140   : > { %v506_v24 = vpop.f32.mrf.mxu2 }
 0x141   : > { %v526_v25 = vpop.f32.mrf.mxu3  ;;  %v507_v26 = vadd.f32 %v506_v24, %v407_v16 }
 0x143   : > { %v527_v27 = vadd.f32 %v526_v25, %v507_v26 }
 0x145   : > { %571 = vst [vmem:[%s1851_s5 + $0x10] sm:$0xff] %v527_v27 }
 0x148   : > { %v600_v28 = vpop.f32.mrf.mxu2 }
 0x149   : > { %v620_v29 = vpop.f32.mrf.mxu3  ;;  %639 = vmatmul.f32.vlgmr.msrb.gmra.mxu0 %v600_v28  ;;  %679 = vmatmul.f32.vlgmr.msrb.gmra.mxu2 %v600_v28 }
 0x14a   : > { %659 = vmatmul.f32.vlgmr.msrb.gmra.mxu1 %v620_v29  ;;  %699 = vmatmul.f32.vlgmr.msrb.gmra.mxu3 %v620_v29 }
 0x151   : > { %719 = vmatmul.f32.vlgmr.msra.gmra.mxu0 %v600_v28  ;;  %759 = vmatmul.f32.vlgmr.msra.gmra.mxu2 %v600_v28 }
 0x152   : > { %739 = vmatmul.f32.vlgmr.msra.gmra.mxu1 %v620_v29  ;;  %779 = vmatmul.f32.vlgmr.msra.gmra.mxu3 %v620_v29 }
 0x1c6   : > { %v640_v30 = vpop.f32.mrf.mxu0 }
 0x1c7   : > { %v660_v31 = vpop.f32.mrf.mxu1  ;;  %v641_v32 = vadd.f32 %v640_v30, %v407_v16 }
 0x1c9   : > { %v661_v33 = vadd.f32 %v660_v31, %v641_v32 }
 0x1cb   : > { %895 = vst [vmem:[%s1851_s5 + $0x20] sm:$0xff] %v661_v33 }
 0x1cc   : > { %v680_v34 = vpop.f32.mrf.mxu2 }
 0x1cd   : > { %v700_v35 = vpop.f32.mrf.mxu3  ;;  %v681_v36 = vadd.f32 %v680_v34, %v407_v16 }
 0x1ce   : > { %v720_v37 = vpop.f32.mrf.mxu0 }
 0x1cf   : > { %v721_v38 = vadd.f32 %v720_v37, %v407_v16  ;;  %v701_v39 = vadd.f32 %v700_v35, %v681_v36  ;;  %v740_v40 = vpop.f32.mrf.mxu1 }
 0x1d1   : > { %v741_v41 = vadd.f32 %v740_v40, %v721_v38  ;;  %896 = vst [vmem:[%s1851_s5 + $0x28] sm:$0xff] %v701_v39 }
 0x1d3   : > { %897 = vst [vmem:[%s1851_s5 + $0x30] sm:$0xff] %v741_v41 }
 0x1d4   : > { %v760_v42 = vpop.f32.mrf.mxu2 }
 0x1d5   : > { %v761_v43 = vadd.f32 %v760_v42, %v407_v16  ;;  %v780_v44 = vpop.f32.mrf.mxu3 }
 0x1d7   : > { %v781_v45 = vadd.f32 %v780_v44, %v761_v43 }
 0x1d9   : > { %898 = vst [vmem:[%s1851_s5 + $0x38] sm:$0xff] %v781_v45 }
 0x1da   : > { %1017 = shalt.err (!%p1014_p7)
}
 0x1db   : > { %s1062_s8 = smov 512   ;;  %s1063_s30 = smov 1024  }
 0x1dc   : > { %s1064_s25 = smov 32  }
 0x1dd   : > { %908 = dma.vmem_to_hbm [thread:$0]  (%p1140_p11), %s802_s14, 1024, %s804_s20, %s789_s19, %s1062_s8, %s1063_s30, %s1064_s25  }
 0x1de PF: > { %s818_s5 = sand.u32 1, %s1044_s15   ;;  %p915_p8 = pnand %p879_p9, %p1144_p12 }
 0x1df   : > { %s819_s29 = scalar_lea.sflag [#allocation4], %s818_s5 }
 0x1e0   : > { %p916_p10 = pneg %p915_p8 }
 0x1e2   : > { %1039 = dma.done.wait (%p916_p10), %s819_s29, 1024  }
 0x1e3   : > { %1041 = vsyncadd (%p916_p10), %s819_s29, 4294966272  ;;  %p17_p1 = scmp.ge.s32.totalorder %s1115_s21, 4   ;;  %s2118_s15 = smov %s1048_s16 }
 0x1e4   : > { %s2119_s16 = smov %s1052_s17  ;;  %s2120_s17 = smov %s1127_s24 }
 0x1e5   : > { %s2121_s18 = smov %s1115_s21  ;;  %19 = sbr.rel (!%p17_p1) target bundleno = 5 (0x5), region = 83 }
 0x1ea   :  { %825 = vsyncpa [#allocation3], 1 }
 0x1eb   :  { %827 = vsyncpa [#allocation3 + $0x1], 1 }
 0x1ec   :  { %828 = vsyncpa [#allocation4], 1 }
 0x1ed   :  { %830 = vsyncpa [#allocation4 + $0x1], 1 }

</bundles_post_ra>
